<compile_context>
chip_gen: v7x
topology: tpu7x:2x2x1
jax: 0.10.0
libtpu: 0.0.40
codegen_flags: <defaults>
</compile_context>

<pallas_src>
import math
from functools import partial

import jax
import jax.numpy as jnp
from jax.experimental import pallas as pl
from jax.experimental.pallas import tpu as pltpu

# Candidate lane-dense widths (all multiples of 128 -> unmasked vst).
_LANE_WIDTHS = (2048, 1024, 512, 256, 128)


def _round_up(x: int, m: int) -> int:
    return ((x + m - 1) // m) * m


def _sublane_multiple(dtype) -> int:
    # 8 for 32-bit, 16 for bf16/f16, 32 for int8/fp8 (sublane packing).
    return max(8, 32 // jnp.dtype(dtype).itemsize)


def _vmem_capacity_bytes() -> int:
    try:
        return int(pltpu.get_tpu_info().vmem_capacity_bytes)
    except Exception:
        return 64 << 20  # conservative default (v7x per-TC VMEM)


def _symrelu_kernel(x_ref, o_ref, *, threshold):
    # One (block_rows, lane_w) tile in VMEM. 3 VPU ops per vreg; HBM-bound.
    x = x_ref[...]
    thr = jnp.asarray(threshold, dtype=x.dtype)
    o_ref[...] = jnp.maximum(thr - jnp.abs(x), jnp.zeros((), dtype=x.dtype))


def _symrelu_2d(x2d, threshold, *, block_bytes, vmem_limit):
    """Run the kernel on an already lane-dense (rows, lane_w) slab."""
    rows, lane_w = x2d.shape
    dtype = x2d.dtype
    itemsize = jnp.dtype(dtype).itemsize
    sub = _sublane_multiple(dtype)

    # Constant-byte blocks across dtypes.
    target_rows = max(sub, block_bytes // (lane_w * itemsize))
    block_rows = min(target_rows, rows)
    # Give both v7x TensorCores work when the array is big enough (>=2 steps).
    if rows >= 2 * sub:
        block_rows = min(block_rows, _round_up(pl.cdiv(rows, 2), sub))
    # Block's sublane dim must be a multiple of `sub` unless it spans the array.
    if block_rows < rows:
        block_rows = _round_up(block_rows, sub)

    grid = (pl.cdiv(rows, block_rows),)  # ragged last block is masked by Pallas

    return pl.pallas_call(
        partial(_symrelu_kernel, threshold=threshold),
        out_shape=jax.ShapeDtypeStruct((rows, lane_w), dtype),
        grid=grid,
        in_specs=[pl.BlockSpec((block_rows, lane_w), lambda i: (i, 0))],
        out_specs=pl.BlockSpec((block_rows, lane_w), lambda i: (i, 0)),
        compiler_params=pltpu.CompilerParams(
            dimension_semantics=("parallel",),  # megacore / 2-TC sharding
            vmem_limit_bytes=vmem_limit,
        ),
        cost_estimate=pl.CostEstimate(
            flops=3 * rows * lane_w,
            transcendentals=0,
            bytes_accessed=2 * rows * lane_w * itemsize,
        ),
    )(x2d)


def sym_relu(x, threshold=1.0):
    """SymReLU forward: relu(threshold - |x|).

    `threshold` must be a static Python number (it is a constructor constant
    in the PyTorch module, not a traced value).
    """
    threshold = float(threshold)  # static by design; raises early if traced
    orig_shape = x.shape
    dtype = x.dtype
    total = math.prod(orig_shape) if orig_shape else 1

    # Empty inputs / non-floating dtypes: trivial fallback (promote to f32 to
    # avoid int abs overflow and threshold truncation), negligible work.
    if total == 0 or not jnp.issubdtype(dtype, jnp.floating):
        xf = x.astype(jnp.float32)
        return jnp.maximum(threshold - jnp.abs(xf), 0.0).astype(dtype)

    # Per-generation byte budget: ~vmem/16 per block buffer (double-buffered
    # in + out => 4 live buffers ~= vmem/4 total), clamped to [2 MiB, 8 MiB].
    #   v7x (64 MiB)  -> 4 MiB/buffer;  v5e/v6e (128 MiB) -> 8 MiB/buffer.
    vmem_cap = _vmem_capacity_bytes()
    block_bytes = int(min(8 << 20, max(2 << 20, vmem_cap // 16)))
    vmem_limit = int(min(int(0.75 * vmem_cap), max(32 << 20, 6 * block_bytes)))

    flat = x.reshape(-1)

    # Pick the widest lane-dense width that divides `total` exactly, so the
    # common (128-aligned) case needs no padding copy / output slice at all.
    lane_w = next((w for w in _LANE_WIDTHS if total % w == 0), None)
    if lane_w is not None:
        out2d = _symrelu_2d(
            flat.reshape(total // lane_w, lane_w), threshold,
            block_bytes=block_bytes, vmem_limit=vmem_limit)
        return out2d.reshape(orig_shape)

    # Misaligned total (total % 128 != 0, rare for NN tensors): run the kernel
    # on the 128-aligned prefix and compute the <128-element tail in plain jnp
    # (no full-tensor pad/unpad passes).
    lane_w = 128
    main = (total // lane_w) * lane_w
    if main == 0:
        return jnp.maximum(threshold - jnp.abs(x), 0.0).astype(dtype)
    head = _symrelu_2d(
        flat[:main].reshape(main // lane_w, lane_w), threshold,
        block_bytes=block_bytes, vmem_limit=vmem_limit).reshape(-1)
    tail = jnp.maximum(threshold - jnp.abs(flat[main:]), 0.0).astype(dtype)
    return jnp.concatenate([head, tail]).reshape(orig_shape)


if __name__ == "__main__":
    key = jax.random.PRNGKey(0)

    # NCHW input, same convention as the PyTorch module.
    x = jax.random.normal(key, (2, 4, 16, 16), dtype=jnp.float32) * 2.0
    y = sym_relu(x, threshold=1.0)
    jax.block_until_ready(y)
    y_ref = jnp.maximum(1.0 - jnp.abs(x), 0.0)
    assert y.shape == x.shape and y.dtype == x.dtype
    assert jnp.allclose(y, y_ref, atol=1e-6), "mismatch vs reference (aligned)"

    # Exercise the misaligned (prefix + tail) path as well.
    x2 = jax.random.normal(jax.random.PRNGKey(1), (2, 3, 129), dtype=jnp.float32) * 2.0
    y2 = sym_relu(x2, threshold=0.5)
    jax.block_until_ready(y2)
    y2_ref = jnp.maximum(0.5 - jnp.abs(x2), 0.0)
    assert y2.shape == x2.shape and y2.dtype == x2.dtype
    assert jnp.allclose(y2, y2_ref, atol=1e-6), "mismatch vs reference (ragged)"

    print("KERNEL_OK")
</pallas_src>

<mosaic_0001>
module attributes {stable_mosaic.version = 11 : i64} {
  func.func @_symrelu_kernel(%arg0: i32, %arg1: memref<1x2048xf32, #tpu.memory_space<vmem>>, %arg2: memref<1x2048xf32, #tpu.memory_space<vmem>>) attributes {dimension_semantics = [#tpu.dimension_semantics<parallel>], iteration_bounds = array<i64: 1>, scalar_prefetch = 0 : i64, scratch_operands = 0 : i64, tpu.core_type = #tpu.core_type<tc>, window_params = [{transform_indices = @transform_0, window_bounds = array<i64: 1, 2048>}, {transform_indices = @transform_1, window_bounds = array<i64: 1, 2048>}]} {
    %c0 = arith.constant 0 : index
    %c0_0 = arith.constant 0 : index
    %0 = vector.load %arg1[%c0, %c0_0] : memref<1x2048xf32, #tpu.memory_space<vmem>>, vector<1x2048xf32>
    %1 = math.absf %0 : vector<1x2048xf32>
    %cst = arith.constant 1.000000e+00 : f32
    %2 = vector.broadcast %cst : f32 to vector<1x2048xf32>
    %3 = arith.subf %2, %1 : vector<1x2048xf32>
    %cst_1 = arith.constant 0.000000e+00 : f32
    %4 = vector.broadcast %cst_1 : f32 to vector<1x2048xf32>
    %5 = arith.maximumf %3, %4 : vector<1x2048xf32>
    %c0_2 = arith.constant 0 : index
    %c0_3 = arith.constant 0 : index
    %6 = vector.load %arg2[%c0_2, %c0_3] : memref<1x2048xf32, #tpu.memory_space<vmem>>, vector<1x2048xf32>
    tpu.vector_store %arg2[%c0_2, %c0_3], %5 {strides = array<i32>} : memref<1x2048xf32, #tpu.memory_space<vmem>>, vector<1x2048xf32>,
    return
  }
  func.func @transform_0(%arg0: i32) -> (i32, i32) {
    %c0_i32 = arith.constant 0 : i32
    %c0_i32_0 = arith.constant 0 : i32
    return %arg0, %c0_i32 : i32, i32
  }
  func.func @transform_1(%arg0: i32) -> (i32, i32) {
    %c0_i32 = arith.constant 0 : i32
    %c0_i32_0 = arith.constant 0 : i32
    return %arg0, %c0_i32 : i32, i32
  }
}

</mosaic_0001>

<bundles_post_ra>
// kernel: tpu_custom_call.1
= control target key start
LH: loop header
LB: loop body
LE: loop exit
PB: predicated region body
PF: predicated region fallthrough
CT: control target
= control target key end

     0   :  { %6 = vsyncpa [#allocation3], 0  ;;  %s132_s0 = inlined_call_operand.hbm [shape: f32[1,2048], index: 0, kind: input, shape index: {}]   ;;  %s133_s1 = inlined_call_operand.hbm [shape: f32[1,2048], index: 1, kind: output, shape index: {}]  }
   0x1   :  { %7 = vsyncpa [#allocation4], 0  ;;  %s96_s6 = smov [#allocation2]   ;;  %s48_s10 = scalar_lea.hbm %s132_s0, 256 }
   0x2   :  { %s14_s7 = sshll.u32 %s96_s6, 4  ;;  %p49_p0 = scmp.ne.s32.totalorder %s132_s0, %s48_s10  ;;  %s15_s7 = int_to_ptr.vmem [resolvable:$true] %s14_s7 }
   0x3   :  { %p52_p1 = scmp.lt.u32.totalorder %s48_s10, %s132_s0 }
   0x5   :  { %p54_p2 = pnand %p52_p1, %p49_p0 }
   0x7   :  { %57 = shalt.err (!%p54_p2)
}
   0x8   :  { %s58_s15 = scalar_lea.vmem %s15_s7, 256  ;;  %p63_p4 = scmp.lt.s32.totalorder %s15_s7, %s15_s7 }
   0x9   :  { %p59_p3 = scmp.ne.s32.totalorder %s15_s7, %s58_s15  ;;  %p64_p5 = scmp.lt.s32.totalorder %s58_s15, %s58_s15 }
   0xb   :  { %p65_p6 = por %p64_p5, %p63_p4 }
   0xd   :  { %p66_p7 = pnand %p65_p6, %p59_p3 }
   0xf   :  { %69 = shalt.err (!%p66_p7)
}
  0x10   :  { %17 = dma.hbm_to_vmem [thread:$0]  %s132_s0, 256, %s15_s7, [#allocation3]  }
  0x11   :  { %92 = dma.done.wait [#allocation3], 256  }
  0x12   :  { %93 = vsyncadd [#allocation3], 4294967040  ;;  %v21_v0 = vld [vmem:[#allocation2] sm:$0xff]  ;;  %v22_v1 = vld [vmem:[#allocation2 + $0x8] sm:$0xff]  ;;  %s97_s18 = smov [#allocation5]  }
  0x13   :  { %v23_v2 = vand.u32 2147483647, %v21_v0  ;;  %v24_v3 = vand.u32 2147483647, %v22_v1  ;;  %s37_s19 = sshll.u32 %s97_s18, 4  ;;  %s38_s19 = int_to_ptr.vmem [resolvable:$true] %s37_s19 }
  0x14   :  { %s70_s20 = scalar_lea.vmem %s38_s19, 256  ;;  %p75_p9 = scmp.lt.s32.totalorder %s38_s19, %s38_s19 }
  0x15   :  { %v25_v4 = vsub.f32 1.0, %v23_v2  ;;  %v26_v5 = vsub.f32 1.0, %v24_v3  ;;  %p71_p8 = scmp.ne.s32.totalorder %s38_s19, %s70_s20  ;;  %p76_p10 = scmp.lt.s32.totalorder %s70_s20, %s70_s20 }
  0x17   :  { %v27_v6 = vmax.f32 %v25_v4, 0.0  ;;  %v28_v7 = vmax.f32 %v26_v5, 0.0  ;;  %p77_p11 = por %p76_p10, %p75_p9 }
  0x19   :  { %29 = vst [vmem:[#allocation5] sm:$0xff] %v27_v6  ;;  %30 = vst [vmem:[#allocation5 + $0x8] sm:$0xff] %v28_v7  ;;  %p78_p12 = pnand %p77_p11, %p71_p8 }
  0x1b   :  { %81 = shalt.err (!%p78_p12)
}
  0x1c   :  { %s82_s22 = scalar_lea.hbm %s133_s1, 256 }
  0x1d   :  { %p83_p13 = scmp.ne.s32.totalorder %s133_s1, %s82_s22  ;;  %p86_p0 = scmp.lt.u32.totalorder %s82_s22, %s133_s1 }
  0x1f   :  { %p88_p1 = pnand %p86_p0, %p83_p13 }
  0x21   :  { %91 = shalt.err (!%p88_p1)
}
  0x22   :  { %40 = dma.vmem_to_hbm [thread:$0]  %s38_s19, 256, %s133_s1, [#allocation4]  }
  0x23   :  { %94 = dma.done.wait [#allocation4], 256  }
  0x24   :  { %95 = vsyncadd [#allocation4], 4294967040 }
  0x25   :  { %44 = vsyncpa [#allocation3], 1 }
  0x26   :  { %45 = vsyncpa [#allocation4], 1 }

</bundles_post_ra>
